<compile_context>
chip_gen: v7x
topology: tpu7x:2x2x1
jax: 0.10.0
libtpu: 0.0.40
codegen_flags: <defaults>
</compile_context>

<pallas_src>
import functools

import jax
import jax.numpy as jnp
from jax import lax
from jax.experimental import pallas as pl
from jax.experimental.pallas import tpu as pltpu


def _dice_partial_kernel(*refs, n_classes, apply_softmax, has_ignore,
                         ragged, s_total, tile_s, tiles_per, approx_recip):
    if has_ignore:
        score_ref, target_ref, ignore_ref, out_ref, acc_ref = refs
    else:
        score_ref, target_ref, out_ref, acc_ref = refs
        ignore_ref = None

    p = pl.program_id(1)
    t = pl.program_id(2)

    # -- init per-(batch, chunk) accumulator on the first tile --------------
    @pl.when(t == 0)
    def _init():
        acc_ref[...] = jnp.zeros_like(acc_ref)

    score = score_ref[...].astype(jnp.float32)          # (C, TS, 128)
    labels = target_ref[...]                             # (1, TS, 128), native dtype

    # keep == True where the element participates in the sums
    keep = None
    if has_ignore:
        keep = ignore_ref[...] != 1                      # (1, TS, 128) bool
    if ragged:
        # OOB sublane rows of the boundary tile hold garbage from the DMA;
        # fold validity into keep (cheap: iota+compare, no per-class selects).
        tile_idx = p * tiles_per + t
        sub = lax.broadcasted_iota(jnp.int32, (1, tile_s, 128), 1)
        valid = sub < (s_total - tile_idx * tile_s)
        keep = valid if keep is None else jnp.logical_and(keep, valid)

    if apply_softmax:
        # class axis is the leading slab dim -> unrolled vreg-wise max/sum
        # (no cross-sublane / cross-lane work); C is small and static.
        m = score[0:1]
        for i in range(1, n_classes):
            m = jnp.maximum(m, score[i:i + 1])
        e = jnp.exp(score - m)
        denom = e[0:1]
        for i in range(1, n_classes):
            denom = denom + e[i:i + 1]
        if approx_recip:
            score = e * pl.reciprocal(denom, approx=True)
        else:
            score = e / denom

    if keep is not None:
        keep_f = keep.astype(jnp.float32)                # (1, TS, 128)
        sk = jnp.where(keep, score, 0.0)                 # masked score (also kills garbage)
    else:
        keep_f = None
        sk = score

    # -- select-based one-hot for ALL classes at once -----------------------
    cls = lax.broadcasted_iota(jnp.int32, (n_classes, 1, 1), 0).astype(labels.dtype)
    eq = labels == cls                                   # (C, TS, 128) bool

    inter_t = jnp.where(eq, sk, 0.0)                     # score * onehot * keep
    if keep_f is None:
        y_t = jnp.where(eq, 1.0, 0.0)                    # onehot
    else:
        y_t = jnp.where(eq, keep_f, 0.0)                 # onehot * keep
    z_t = sk * sk                                        # score^2 * keep

    # lane reduction only (XLU slot); cross-tile accumulation into scratch.
    acc_ref[0] += jnp.sum(inter_t, axis=-1)              # (C, TS)
    acc_ref[1] += jnp.sum(y_t, axis=-1)
    acc_ref[2] += jnp.sum(z_t, axis=-1)

    # -- emit per-(batch, chunk) partials on the last tile -------------------
    @pl.when(t == pl.num_programs(2) - 1)
    def _final():
        out_ref[...] = acc_ref[...]


def dice_loss_pallas(inputs, target, n_classes, weight=None, softmax=False,
                     ignore=None, tile_elems=262144, approx_recip=False):
    """Pallas implementation of DiceLoss.forward.

    inputs: (N, C, H, W) logits/probs (any float dtype; bf16 halves HBM traffic);
    target: (N, 1, H, W) or (N, H, W) class ids (float or int, native dtype);
    ignore: optional mask, elements where ignore == 1 are excluded from the sums.
    """
    N, C, H, W = inputs.shape
    assert C == n_classes, "predict & target shape do not match"
    HW = H * W
    has_ignore = ignore is not None

    # free row-major views; NO dtype casts / mask folding here (saves HBM passes)
    score = inputs.reshape(N, C, HW)
    tgt = target.reshape(N, HW)
    ig = ignore.reshape(N, HW) if has_ignore else None

    # spatial axis must be a multiple of 128 lanes for the (S, 128) view
    if HW % 128 != 0:
        # TODO(synk): this pad is an extra HBM pass; only hit when H*W is not a
        # multiple of 128 (pad upstream to avoid it).
        pad = 128 - HW % 128
        score = jnp.pad(score, ((0, 0), (0, 0), (0, pad)))                   # 0 -> no z
        tgt = jnp.pad(tgt, ((0, 0), (0, pad)), constant_values=-1)           # never a class
        if has_ignore:
            ig = jnp.pad(ig, ((0, 0), (0, pad)), constant_values=1)          # ignored
        HWp = HW + pad
    else:
        HWp = HW
    S = HWp // 128

    score = score.reshape(N, C, S, 128)
    tgt = tgt.reshape(N, 1, S, 128)
    if has_ignore:
        ig = ig.reshape(N, 1, S, 128)

    # -- generation-aware tile sizing (sublane rows of 128 lanes) ------------
    sbytes = jnp.dtype(score.dtype).itemsize
    tbytes = jnp.dtype(tgt.dtype).itemsize
    ibytes = jnp.dtype(ig.dtype).itemsize if has_ignore else 0
    try:
        vmem_cap = int(pltpu.get_tpu_info().vmem_capacity_bytes)
    except Exception:
        vmem_cap = 64 * 1024 * 1024                 # conservative (v7x per-core VMEM)
    vmem_budget = vmem_cap // 2
    # per spatial element: double-buffered input streams + live f32 temporaries
    per_row = (2 * (C * sbytes + tbytes + ibytes) + (6 * C + 8) * 4) * 128
    ts_cap = max(1, vmem_budget // per_row)
    ts_target = min(ts_cap, max(1, tile_elems // 128), S)

    def _sub_tile(dt):                               # min sublane granularity per dtype
        return 8 * max(1, 4 // jnp.dtype(dt).itemsize)
    min_sub = max([_sub_tile(score.dtype), _sub_tile(tgt.dtype)] +
                  ([_sub_tile(ig.dtype)] if has_ignore else []))

    if ts_target >= S:
        TS = S
    else:
        ts_target = max(min_sub, (ts_target // min_sub) * min_sub)
        TS = None
        for d in range(ts_target, min_sub - 1, -min_sub):   # prefer divisor of S
            if S % d == 0:
                TS = d
                break
        if TS is None or 2 * TS < ts_target:
            TS = ts_target                               # accept a ragged last tile
        TS = min(TS, S)
    ragged = (S % TS) != 0
    n_tiles = pl.cdiv(S, TS)

    # split the tile axis into two "parallel" chunks so both v7x TensorCores are
    # engaged even when N == 1 (no effect on single-core v5e/v6e).
    n_par = 2 if (n_tiles % 2 == 0 and n_tiles >= 2) else 1
    tiles_per = n_tiles // n_par

    kern = functools.partial(
        _dice_partial_kernel, n_classes=C, apply_softmax=bool(softmax),
        has_ignore=has_ignore, ragged=ragged, s_total=S, tile_s=TS,
        tiles_per=tiles_per, approx_recip=bool(approx_recip))

    in_specs = [
        pl.BlockSpec((None, C, TS, 128), lambda b, p, t: (b, 0, p * tiles_per + t, 0)),
        pl.BlockSpec((None, 1, TS, 128), lambda b, p, t: (b, 0, p * tiles_per + t, 0)),
    ]
    args = [score, tgt]
    if has_ignore:
        in_specs.append(
            pl.BlockSpec((None, 1, TS, 128), lambda b, p, t: (b, 0, p * tiles_per + t, 0)))
        args.append(ig)

    out_shape = jax.ShapeDtypeStruct((N, n_par, 3, C, TS), jnp.float32)
    out_spec = pl.BlockSpec((None, None, 3, C, TS), lambda b, p, t: (b, p, 0, 0, 0))

    parts = pl.pallas_call(
        kern,
        out_shape=out_shape,
        grid_spec=pltpu.PrefetchScalarGridSpec(
            num_scalar_prefetch=0,
            grid=(N, n_par, tiles_per),
            in_specs=in_specs,
            out_specs=out_spec,
            scratch_shapes=[pltpu.VMEM((3, C, TS), jnp.float32)],
        ),
        compiler_params=pltpu.CompilerParams(
            dimension_semantics=("parallel", "parallel", "arbitrary"),
            vmem_limit_bytes=int(vmem_cap * 0.75)),
    )(*args)

    # tiny XLA epilogue: combine (N, P, 3, C, TS) partials into the scalar loss
    sums = jnp.sum(parts, axis=(0, 1, 4))                # (3, C)
    inter, ysum, zsum = sums[0], sums[1], sums[2]
    smooth = jnp.float32(1e-5)
    dice = 1.0 - (2.0 * inter + smooth) / (zsum + ysum + smooth)
    if weight is None:
        weight = [1.0] * n_classes
    w = jnp.asarray(weight, jnp.float32)
    return jnp.sum(dice[1:] * w[1:])


def dice_loss_ref(inputs, target, n_classes, weight=None, softmax=False, ignore=None):
    """Plain-JAX reference matching the PyTorch module semantics."""
    inputs = inputs.astype(jnp.float32)
    if softmax:
        inputs = jax.nn.softmax(inputs, axis=1)
    tgt = target.astype(jnp.float32)
    one_hot = jnp.concatenate(
        [(tgt == jnp.float32(i)).astype(jnp.float32) for i in range(n_classes)],
        axis=1)
    if weight is None:
        weight = [1.0] * n_classes
    smooth = 1e-5
    loss = jnp.float32(0.0)
    for i in range(1, n_classes):
        s = inputs[:, i]
        t = one_hot[:, i]
        if ignore is None:
            keep = jnp.ones_like(s)
        else:
            keep = (ignore != 1).astype(jnp.float32)
        inter = jnp.sum(s * t * keep)
        y = jnp.sum(t * t * keep)
        z = jnp.sum(s * s * keep)
        dice = 1.0 - (2.0 * inter + smooth) / (z + y + smooth)
        loss = loss + dice * weight[i]
    return loss


if __name__ == "__main__":
    key = jax.random.PRNGKey(0)
    ks = jax.random.split(key, 12)

    def check(name, out, ref, rtol=1e-4, atol=1e-5):
        out = jax.block_until_ready(out)
        assert jnp.allclose(out, ref, rtol=rtol, atol=atol), (name, out, ref)

    # case 1: softmax + ignore mask (single full tile)
    N, C, H, W = 2, 4, 16, 16
    x1 = jax.random.normal(ks[0], (N, C, H, W), jnp.float32)
    t1 = jax.random.randint(ks[1], (N, 1, H, W), 0, C).astype(jnp.float32)
    g1 = jax.random.randint(ks[2], (N, H, W), 0, 2).astype(jnp.float32)
    check("softmax+ignore",
          dice_loss_pallas(x1, t1, C, softmax=True, ignore=g1),
          dice_loss_ref(x1, t1, C, softmax=True, ignore=g1))

    # case 2: no softmax, custom weights, no ignore
    wts = [0.0, 0.5, 1.0, 2.0]
    check("weights",
          dice_loss_pallas(x1, t1, C, weight=wts, softmax=False, ignore=None),
          dice_loss_ref(x1, t1, C, weight=wts, softmax=False, ignore=None))

    # case 3: multi-tile accumulation + dual-TensorCore split (grid (1, 2, 2)),
    #         int32 labels streamed natively
    N3, C3, H3, W3 = 1, 3, 64, 64
    x3 = jax.random.normal(ks[3], (N3, C3, H3, W3), jnp.float32)
    t3 = jax.random.randint(ks[4], (N3, 1, H3, W3), 0, C3)
    check("multi-tile/megacore",
          dice_loss_pallas(x3, t3, C3, softmax=True, tile_elems=1024),
          dice_loss_ref(x3, t3, C3, softmax=True))

    # case 4: ragged spatial tiling (S=18, TS=8) + ignore mask
    N4, C4, H4, W4 = 2, 5, 48, 48
    x4 = jax.random.normal(ks[5], (N4, C4, H4, W4), jnp.float32)
    t4 = jax.random.randint(ks[6], (N4, 1, H4, W4), 0, C4).astype(jnp.float32)
    g4 = jax.random.randint(ks[7], (N4, H4, W4), 0, 2).astype(jnp.float32)
    check("ragged",
          dice_loss_pallas(x4, t4, C4, softmax=False, ignore=g4, tile_elems=1024),
          dice_loss_ref(x4, t4, C4, softmax=False, ignore=g4))

    # case 5: bf16 score (native narrow HBM stream) + H*W not a multiple of 128
    N5, C5, H5, W5 = 1, 4, 12, 12
    x5 = jax.random.normal(ks[8], (N5, C5, H5, W5), jnp.float32).astype(jnp.bfloat16)
    t5 = jax.random.randint(ks[9], (N5, 1, H5, W5), 0, C5).astype(jnp.float32)
    check("bf16+pad",
          dice_loss_pallas(x5, t5, C5, softmax=False),
          dice_loss_ref(x5.astype(jnp.float32), t5, C5, softmax=False),
          rtol=1e-3, atol=1e-4)

    print("KERNEL_OK")
</pallas_src>

<mosaic_0001>
module attributes {stable_mosaic.version = 11 : i64} {
  func.func @_dice_partial_kernel(%arg0: i32, %arg1: i32, %arg2: i32, %arg3: memref<1x4x2x128xf32, #tpu.memory_space<vmem>>, %arg4: memref<1x1x2x128xf32, #tpu.memory_space<vmem>>, %arg5: memref<1x1x2x128xf32, #tpu.memory_space<vmem>>, %arg6: memref<1x1x3x4x2xf32, #tpu.memory_space<vmem>>, %arg7: memref<3x4x2xf32, #tpu.memory_space<vmem>>) attributes {dimension_semantics = [#tpu.dimension_semantics<parallel>, #tpu.dimension_semantics<parallel>, #tpu.dimension_semantics<arbitrary>], iteration_bounds = array<i64: 2, 1, 1>, scalar_prefetch = 0 : i64, scratch_operands = 1 : i64, tpu.core_type = #tpu.core_type<tc>, window_params = [{transform_indices = @transform_0, window_bounds = array<i64: 1, 4, 2, 128>}, {transform_indices = @transform_1, window_bounds = array<i64: 1, 1, 2, 128>}, {transform_indices = @transform_2, window_bounds = array<i64: 1, 1, 2, 128>}, {transform_indices = @transform_3, window_bounds = array<i64: 1, 1, 3, 4, 2>}]} {
    %c0_i32 = arith.constant 0 : i32
    %0 = arith.cmpi eq, %arg2, %c0_i32 : i32
    %1 = arith.extui %0 : i1 to i32
    %c0_i32_0 = arith.constant 0 : i32
    %2 = arith.cmpi ne, %1, %c0_i32_0 : i32
    scf.if %2 {
      %cst_36 = arith.constant 0.000000e+00 : f32
      %72 = vector.broadcast %cst_36 : f32 to vector<3x4x2xf32>
      %c0_37 = arith.constant 0 : index
      %c0_38 = arith.constant 0 : index
      %c0_39 = arith.constant 0 : index
      %73 = vector.load %arg7[%c0_37, %c0_38, %c0_39] : memref<3x4x2xf32, #tpu.memory_space<vmem>>, vector<3x4x2xf32>
      tpu.vector_store %arg7[%c0_37, %c0_38, %c0_39], %72 {strides = array<i32>} : memref<3x4x2xf32, #tpu.memory_space<vmem>>, vector<3x4x2xf32>,
    } else {
    }
    %c0 = arith.constant 0 : index
    %c0_1 = arith.constant 0 : index
    %c0_2 = arith.constant 0 : index
    %c0_3 = arith.constant 0 : index
    %3 = vector.load %arg3[%c0, %c0_1, %c0_2, %c0_3] : memref<1x4x2x128xf32, #tpu.memory_space<vmem>>, vector<1x4x2x128xf32>
    %4 = vector.shape_cast %3 : vector<1x4x2x128xf32> to vector<4x2x128xf32>
    %c0_4 = arith.constant 0 : index
    %c0_5 = arith.constant 0 : index
    %c0_6 = arith.constant 0 : index
    %c0_7 = arith.constant 0 : index
    %5 = vector.load %arg4[%c0_4, %c0_5, %c0_6, %c0_7] : memref<1x1x2x128xf32, #tpu.memory_space<vmem>>, vector<1x1x2x128xf32>
    %6 = vector.shape_cast %5 : vector<1x1x2x128xf32> to vector<1x2x128xf32>
    %c0_8 = arith.constant 0 : index
    %c0_9 = arith.constant 0 : index
    %c0_10 = arith.constant 0 : index
    %c0_11 = arith.constant 0 : index
    %7 = vector.load %arg5[%c0_8, %c0_9, %c0_10, %c0_11] : memref<1x1x2x128xf32, #tpu.memory_space<vmem>>, vector<1x1x2x128xf32>
    %8 = vector.shape_cast %7 : vector<1x1x2x128xf32> to vector<1x2x128xf32>
    %cst = arith.constant 1.000000e+00 : f32
    %9 = vector.broadcast %cst : f32 to vector<1x2x128xf32>
    %10 = arith.cmpf one, %8, %9 : vector<1x2x128xf32>
    %11 = vector.extract_strided_slice %4 {offsets = [0, 0, 0], sizes = [1, 2, 128], strides = [1, 1, 1]} : vector<4x2x128xf32> to vector<1x2x128xf32>
    %12 = vector.extract_strided_slice %4 {offsets = [1, 0, 0], sizes = [1, 2, 128], strides = [1, 1, 1]} : vector<4x2x128xf32> to vector<1x2x128xf32>
    %13 = arith.maximumf %11, %12 : vector<1x2x128xf32>
    %14 = vector.extract_strided_slice %4 {offsets = [2, 0, 0], sizes = [1, 2, 128], strides = [1, 1, 1]} : vector<4x2x128xf32> to vector<1x2x128xf32>
    %15 = arith.maximumf %13, %14 : vector<1x2x128xf32>
    %16 = vector.extract_strided_slice %4 {offsets = [3, 0, 0], sizes = [1, 2, 128], strides = [1, 1, 1]} : vector<4x2x128xf32> to vector<1x2x128xf32>
    %17 = arith.maximumf %15, %16 : vector<1x2x128xf32>
    %18 = vector.broadcast %17 : vector<1x2x128xf32> to vector<4x2x128xf32>
    %19 = arith.subf %4, %18 : vector<4x2x128xf32>
    %20 = math.exp %19 : vector<4x2x128xf32>
    %21 = vector.extract_strided_slice %20 {offsets = [0, 0, 0], sizes = [1, 2, 128], strides = [1, 1, 1]} : vector<4x2x128xf32> to vector<1x2x128xf32>
    %22 = vector.extract_strided_slice %20 {offsets = [1, 0, 0], sizes = [1, 2, 128], strides = [1, 1, 1]} : vector<4x2x128xf32> to vector<1x2x128xf32>
    %23 = arith.addf %21, %22 : vector<1x2x128xf32>
    %24 = vector.extract_strided_slice %20 {offsets = [2, 0, 0], sizes = [1, 2, 128], strides = [1, 1, 1]} : vector<4x2x128xf32> to vector<1x2x128xf32>
    %25 = arith.addf %23, %24 : vector<1x2x128xf32>
    %26 = vector.extract_strided_slice %20 {offsets = [3, 0, 0], sizes = [1, 2, 128], strides = [1, 1, 1]} : vector<4x2x128xf32> to vector<1x2x128xf32>
    %27 = arith.addf %25, %26 : vector<1x2x128xf32>
    %28 = vector.broadcast %27 : vector<1x2x128xf32> to vector<4x2x128xf32>
    %29 = arith.divf %20, %28 : vector<4x2x128xf32>
    %30 = arith.extui %10 : vector<1x2x128xi1> to vector<1x2x128xi32>
    %31 = arith.sitofp %30 : vector<1x2x128xi32> to vector<1x2x128xf32>
    %cst_12 = arith.constant 0.000000e+00 : f32
    %32 = vector.shape_cast %10 : vector<1x2x128xi1> to vector<1x2x128xi1>
    %33 = vector.broadcast %32 : vector<1x2x128xi1> to vector<4x2x128xi1>
    %34 = vector.broadcast %cst_12 : f32 to vector<4x2x128xf32>
    %35 = arith.select %33, %29, %34 : vector<4x2x128xi1>, vector<4x2x128xf32>
    %36 = tpu.iota {dimensions = array<i32: 0>} : vector<4x1x1xi32>
    %37 = arith.sitofp %36 : vector<4x1x1xi32> to vector<4x1x1xf32>
    %38 = vector.broadcast %6 : vector<1x2x128xf32> to vector<4x2x128xf32>
    %39 = vector.broadcast %37 : vector<4x1x1xf32> to vector<4x2x128xf32>
    %40 = arith.cmpf oeq, %38, %39 : vector<4x2x128xf32>
    %cst_13 = arith.constant 0.000000e+00 : f32
    %41 = vector.broadcast %cst_13 : f32 to vector<4x2x128xf32>
    %42 = arith.select %40, %35, %41 : vector<4x2x128xi1>, vector<4x2x128xf32>
    %cst_14 = arith.constant 0.000000e+00 : f32
    %43 = vector.shape_cast %31 : vector<1x2x128xf32> to vector<1x2x128xf32>
    %44 = vector.broadcast %43 : vector<1x2x128xf32> to vector<4x2x128xf32>
    %45 = vector.broadcast %cst_14 : f32 to vector<4x2x128xf32>
    %46 = arith.select %40, %44, %45 : vector<4x2x128xi1>, vector<4x2x128xf32>
    %47 = arith.mulf %35, %35 : vector<4x2x128xf32>
    %c0_15 = arith.constant 0 : index
    %c0_16 = arith.constant 0 : index
    %c0_17 = arith.constant 0 : index
    %48 = vector.load %arg7[%c0_15, %c0_16, %c0_17] : memref<3x4x2xf32, #tpu.memory_space<vmem>>, vector<1x4x2xf32>
    %49 = vector.shape_cast %48 : vector<1x4x2xf32> to vector<4x2xf32>
    %cst_18 = arith.constant dense<0.000000e+00> : vector<4x2xf32>
    %50 = vector.multi_reduction <add>, %42, %cst_18 [2] : vector<4x2x128xf32> to vector<4x2xf32>
    %51 = arith.addf %49, %50 : vector<4x2xf32>
    %c0_19 = arith.constant 0 : index
    %c0_20 = arith.constant 0 : index
    %c0_21 = arith.constant 0 : index
    %52 = vector.load %arg7[%c0_19, %c0_20, %c0_21] : memref<3x4x2xf32, #tpu.memory_space<vmem>>, vector<1x4x2xf32>
    %53 = vector.shape_cast %52 : vector<1x4x2xf32> to vector<4x2xf32>
    %54 = vector.shape_cast %51 : vector<4x2xf32> to vector<1x4x2xf32>
    tpu.vector_store %arg7[%c0_19, %c0_20, %c0_21], %54 {strides = array<i32>} : memref<3x4x2xf32, #tpu.memory_space<vmem>>, vector<1x4x2xf32>,
    %c1 = arith.constant 1 : index
    %c0_22 = arith.constant 0 : index
    %c0_23 = arith.constant 0 : index
    %55 = vector.load %arg7[%c1, %c0_22, %c0_23] : memref<3x4x2xf32, #tpu.memory_space<vmem>>, vector<1x4x2xf32>
    %56 = vector.shape_cast %55 : vector<1x4x2xf32> to vector<4x2xf32>
    %cst_24 = arith.constant dense<0.000000e+00> : vector<4x2xf32>
    %57 = vector.multi_reduction <add>, %46, %cst_24 [2] : vector<4x2x128xf32> to vector<4x2xf32>
    %58 = arith.addf %56, %57 : vector<4x2xf32>
    %c1_25 = arith.constant 1 : index
    %c0_26 = arith.constant 0 : index
    %c0_27 = arith.constant 0 : index
    %59 = vector.load %arg7[%c1_25, %c0_26, %c0_27] : memref<3x4x2xf32, #tpu.memory_space<vmem>>, vector<1x4x2xf32>
    %60 = vector.shape_cast %59 : vector<1x4x2xf32> to vector<4x2xf32>
    %61 = vector.shape_cast %58 : vector<4x2xf32> to vector<1x4x2xf32>
    tpu.vector_store %arg7[%c1_25, %c0_26, %c0_27], %61 {strides = array<i32>} : memref<3x4x2xf32, #tpu.memory_space<vmem>>, vector<1x4x2xf32>,
    %c2 = arith.constant 2 : index
    %c0_28 = arith.constant 0 : index
    %c0_29 = arith.constant 0 : index
    %62 = vector.load %arg7[%c2, %c0_28, %c0_29] : memref<3x4x2xf32, #tpu.memory_space<vmem>>, vector<1x4x2xf32>
    %63 = vector.shape_cast %62 : vector<1x4x2xf32> to vector<4x2xf32>
    %cst_30 = arith.constant dense<0.000000e+00> : vector<4x2xf32>
    %64 = vector.multi_reduction <add>, %47, %cst_30 [2] : vector<4x2x128xf32> to vector<4x2xf32>
    %65 = arith.addf %63, %64 : vector<4x2xf32>
    %c2_31 = arith.constant 2 : index
    %c0_32 = arith.constant 0 : index
    %c0_33 = arith.constant 0 : index
    %66 = vector.load %arg7[%c2_31, %c0_32, %c0_33] : memref<3x4x2xf32, #tpu.memory_space<vmem>>, vector<1x4x2xf32>
    %67 = vector.shape_cast %66 : vector<1x4x2xf32> to vector<4x2xf32>
    %68 = vector.shape_cast %65 : vector<4x2xf32> to vector<1x4x2xf32>
    tpu.vector_store %arg7[%c2_31, %c0_32, %c0_33], %68 {strides = array<i32>} : memref<3x4x2xf32, #tpu.memory_space<vmem>>, vector<1x4x2xf32>,
    %c0_i32_34 = arith.constant 0 : i32
    %69 = arith.cmpi eq, %arg2, %c0_i32_34 : i32
    %70 = arith.extui %69 : i1 to i32
    %c0_i32_35 = arith.constant 0 : i32
    %71 = arith.cmpi ne, %70, %c0_i32_35 : i32
    scf.if %71 {
      %c0_36 = arith.constant 0 : index
      %c0_37 = arith.constant 0 : index
      %c0_38 = arith.constant 0 : index
      %72 = vector.load %arg7[%c0_36, %c0_37, %c0_38] : memref<3x4x2xf32, #tpu.memory_space<vmem>>, vector<3x4x2xf32>
      %c0_39 = arith.constant 0 : index
      %c0_40 = arith.constant 0 : index
      %c0_41 = arith.constant 0 : index
      %c0_42 = arith.constant 0 : index
      %c0_43 = arith.constant 0 : index
      %73 = vector.load %arg6[%c0_39, %c0_40, %c0_41, %c0_42, %c0_43] : memref<1x1x3x4x2xf32, #tpu.memory_space<vmem>>, vector<1x1x3x4x2xf32>
      %74 = vector.shape_cast %73 : vector<1x1x3x4x2xf32> to vector<3x4x2xf32>
      %75 = vector.shape_cast %72 : vector<3x4x2xf32> to vector<1x1x3x4x2xf32>
      tpu.vector_store %arg6[%c0_39, %c0_40, %c0_41, %c0_42, %c0_43], %75 {strides = array<i32>} : memref<1x1x3x4x2xf32, #tpu.memory_space<vmem>>, vector<1x1x3x4x2xf32>,
    } else {
    }
    return
  }
  func.func @transform_0(%arg0: i32, %arg1: i32, %arg2: i32) -> (i32, i32, i32, i32) {
    %c1_i32 = arith.constant 1 : i32
    %0 = arith.muli %arg1, %c1_i32 : i32
    %1 = arith.addi %0, %arg2 : i32
    %c0_i32 = arith.constant 0 : i32
    %c0_i32_0 = arith.constant 0 : i32
    %c0_i32_1 = arith.constant 0 : i32
    return %arg0, %c0_i32, %1, %c0_i32_0 : i32, i32, i32, i32
  }
  func.func @transform_1(%arg0: i32, %arg1: i32, %arg2: i32) -> (i32, i32, i32, i32) {
    %c1_i32 = arith.constant 1 : i32
    %0 = arith.muli %arg1, %c1_i32 : i32
    %1 = arith.addi %0, %arg2 : i32
    %c0_i32 = arith.constant 0 : i32
    %c0_i32_0 = arith.constant 0 : i32
    %c0_i32_1 = arith.constant 0 : i32
    return %arg0, %c0_i32, %1, %c0_i32_0 : i32, i32, i32, i32
  }
  func.func @transform_2(%arg0: i32, %arg1: i32, %arg2: i32) -> (i32, i32, i32, i32) {
    %c1_i32 = arith.constant 1 : i32
    %0 = arith.muli %arg1, %c1_i32 : i32
    %1 = arith.addi %0, %arg2 : i32
    %c0_i32 = arith.constant 0 : i32
    %c0_i32_0 = arith.constant 0 : i32
    %c0_i32_1 = arith.constant 0 : i32
    return %arg0, %c0_i32, %1, %c0_i32_0 : i32, i32, i32, i32
  }
  func.func @transform_3(%arg0: i32, %arg1: i32, %arg2: i32) -> (i32, i32, i32, i32, i32) {
    %c0_i32 = arith.constant 0 : i32
    %c0_i32_0 = arith.constant 0 : i32
    %c0_i32_1 = arith.constant 0 : i32
    %c0_i32_2 = arith.constant 0 : i32
    return %arg0, %arg1, %c0_i32, %c0_i32_0, %c0_i32_1 : i32, i32, i32, i32, i32
  }
}

</mosaic_0001>

<bundles_post_ra>
// kernel: tpu_custom_call.1
= control target key start
LH: loop header
LB: loop body
LE: loop exit
PB: predicated region body
PF: predicated region fallthrough
CT: control target
= control target key end

     0   :  { %8 = vsyncpa [#allocation4], 0  ;;  %s1114_s0 = inlined_call_operand.hbm [shape: f32[2,4,2,128], index: 0, kind: input, shape index: {}]   ;;  %s1115_s1 = inlined_call_operand.hbm [shape: f32[2,1,2,128], index: 1, kind: input, shape index: {}]   ;;  %s1116_s2 = inlined_call_operand.vmem [shape: f32[2,1,2,128], index: 2, kind: input, shape index: {}]   ;;  %s1117_s3 = inlined_call_operand.vmem [shape: f32[2,1,3,4,2], index: 3, kind: output, shape index: {}]  }
   0x1   :  { %10 = vsyncpa [#allocation4 + $0x1], 0 }
   0x2   :  { %11 = vsyncpa [#allocation6], 0 }
   0x3   :  { %13 = vsyncpa [#allocation6 + $0x1], 0  ;;  %s880_s12 = smov 0   ;;  %s882_s13 = smov 0  }
   0x4   :  { %s884_s14 = smov 0   ;;  %s886_s15 = smov 0  }
   0x5   :  { %s888_s16 = smov 0   ;;  %s890_s17 = smov 0  }
   0x6 LB: > { %s647_s18 = sadd.s32 4294967295, %s853_s17   ;;  %s38_s19 = sadd.s32 1, %s849_s16  ;;  %s853_s17 = sphi %s890_s17, %s19_s17   ;;  %s849_s16 = sphi %s888_s16, %s1129_s16   ;;  %s845_s15 = sphi %s886_s15, %s1128_s15   ;;  %s841_s14 = sphi %s884_s14, %s1127_s14   ;;  %s837_s13 = sphi %s882_s13, %s1126_s13   ;;  %s833_s12 = sphi %s880_s12, %s1125_s12  }
   0x7   : > { %p40_p0 = scmp.ge.s32.totalorder %s38_s19, 2  ;;  %s49_s20 = sadd.s32 1, %s841_s14 }
   0x8   : > { %p56_p1 = scmp.ne.s32.totalorder %s841_s14, %s837_s13  ;;  %p57_p2 = scmp.eq.s32.totalorder %s853_s17, 0 }
   0x9   : > { %s1131_s19 = smov (%p40_p0, %s38_s19), 0  ;;  %p62_p4 = scmp.ne.s32.totalorder %s837_s13, %s833_s12 }
   0xa   : > { %p916_p3 = por %p57_p2, %p56_p1  ;;  %s44_s22 = ssub.s32 %s849_s16, %s1131_s19 }
   0xb   : > { %p63_p5 = scmp.eq.s32.totalorder %s647_s18, 0  ;;  %p47_p6 = scmp.eq.s32.totalorder %s44_s22, 0 }
   0xc   : > { %p677_p8 = scmp.lt.s32.totalorder %s853_s17, 2  ;;  %s932_s25 = sand.u32 1, %s841_s14  }
   0xd   : > { %p923_p7 = por %p63_p5, %p62_p4  ;;  %s664_s26 = sshll.u32 %s849_s16, 7 }
   0xe   : > { %s929_s24 = scalar_select %p47_p6, %s841_s14, %s49_s20  }
   0xf   : > { %s1120_s23 = scalar_select %p923_p7, 1, 0 }
  0x10   : > { %s651_s27 = sshll.u32 %s932_s25, 3  ;;  %s939_s30 = scalar_lea.hbm %s1114_s0, %s664_s26 }
  0x11   : > { %s178_s4 = scalar_lea.vmem [#allocation3], %s651_s27  ;;  %p943_p9 = pnand %p677_p8, %p916_p3 }
  0x12   : > { %s187_s5 = sshll.u32 %s178_s4, 4  ;;  %s175_s7 = scalar_lea.sflag [#allocation4], %s932_s25  ;;  %s947_s5 = int_to_ptr.vmem [resolvable:$true] %s187_s5 }
  0x13   : > { %s739_s8 = scalar_lea.hbm %s939_s30, 128  ;;  %p741_p11 = pneg %p943_p9 }
  0x14   : > { %p740_p10 = scmp.ne.s32.totalorder %s939_s30, %s739_s8  ;;  %s744_s11 = scalar_lea.hbm %s1114_s0, 256 }
  0x15   : > { %p745_p0 = scmp.lt.u32.totalorder %s939_s30, %s1114_s0  ;;  %p746_p1 = scmp.lt.u32.totalorder %s744_s11, %s739_s8 }
  0x16   : > { %p742_p12 = pnand %p741_p11, %p740_p10  ;;  %p748_p3 = scmp.lt.u32.totalorder %s739_s8, %s939_s30 }
  0x17   : > { %p747_p2 = por %p746_p1, %p745_p0 }
  0x18   : > { %p743_p13 = pneg %p742_p12 }
  0x19   : > { %p749_p4 = por %p748_p3, %p747_p2 }
  0x1b   : > { %p750_p5 = pnand %p749_p4, %p743_p13 }
  0x1d   : > { %753 = shalt.err (!%p750_p5)
}
  0x1e   : > { %s754_s20 = scalar_lea.vmem %s947_s5, 128  ;;  %s855_s21 = smov [#allocation3]  }
  0x1f   : > { %p755_p6 = scmp.ne.s32.totalorder %s947_s5, %s754_s20  ;;  %s759_s22 = sshll.u32 %s855_s21, 4  ;;  %s760_s22 = int_to_ptr.vmem [resolvable:$false] %s759_s22 }
  0x20   : > { %s761_s26 = scalar_lea.vmem %s760_s22, 256  ;;  %p762_p12 = scmp.lt.s32.totalorder %s947_s5, %s760_s22 }
  0x21   : > { %p757_p8 = pnand %p755_p6, %p741_p11  ;;  %p763_p0 = scmp.lt.s32.totalorder %s761_s26, %s754_s20 }
  0x23   : > { %p758_p10 = pneg %p757_p8  ;;  %p764_p1 = por %p763_p0, %p762_p12 }
  0x25   : > { %p765_p2 = pnand %p764_p1, %p758_p10 }
  0x27   : > { %768 = shalt.err (!%p765_p2)
}
  0x28   : > { %s856_s27 = smov 32   ;;  %s857_s28 = smov 2  }
  0x29   : > { %673 = dma.hbm_to_vmem [thread:$0]  (!%p943_p9), %s939_s30, 128, %s947_s5, %s175_s7, %s856_s27, %s856_s27, %s857_s28  }
  0x2a   : > { %p656_p13 = scmp.ge.s32.totalorder %s853_s17, 1  ;;  %p227_p3 = scmp.lt.s32.totalorder %s853_s17, 3 }
  0x2b   : > { %s654_s29 = sshll.u32 %s932_s25, 1  ;;  %s655_s8 = sshll.u32 %s849_s16, 5 }
  0x2c   : > { %p980_p4 = pnand %p656_p13, %p227_p3  ;;  %s201_s9 = scalar_lea.vmem [#allocation5], %s654_s29 }
  0x2d   : > { %s210_s10 = sshll.u32 %s201_s9, 4  ;;  %s988_s18 = scalar_lea.hbm %s1115_s1, %s655_s8  ;;  %s211_s10 = int_to_ptr.vmem [resolvable:$true] %s210_s10 }
  0x2e   : > { %s1122_s4 = scalar_select %p980_p4, 1, 0 }
  0x2f   : > { %s198_s30 = scalar_lea.sflag [#allocation6], %s932_s25  ;;  %s769_s5 = scalar_lea.hbm %s988_s18, 32 }
  0x30   : > { %p770_p5 = scmp.ne.s32.totalorder %s988_s18, %s769_s5  ;;  %s774_s21 = scalar_lea.hbm %s1115_s1, 64 }
  0x31   : > { %p775_p10 = scmp.lt.u32.totalorder %s988_s18, %s1115_s1  ;;  %p776_p12 = scmp.lt.u32.totalorder %s774_s21, %s769_s5 }
  0x32   : > { %p772_p6 = pnand %p770_p5, %p741_p11  ;;  %p778_p1 = scmp.lt.u32.totalorder %s769_s5, %s988_s18 }
  0x33   : > { %p777_p0 = por %p776_p12, %p775_p10 }
  0x34   : > { %p773_p8 = pneg %p772_p6 }
  0x35   : > { %p779_p2 = por %p778_p1, %p777_p0 }
  0x37   : > { %p780_p13 = pnand %p779_p2, %p773_p8 }
  0x39   : > { %783 = shalt.err (!%p780_p13)
}
  0x3a   : > { %s784_s25 = scalar_lea.vmem %s211_s10, 32  ;;  %s858_s27 = smov [#allocation5]  }
  0x3b   : > { %p785_p3 = scmp.ne.s32.totalorder %s211_s10, %s784_s25  ;;  %s789_s28 = sshll.u32 %s858_s27, 4  ;;  %s790_s28 = int_to_ptr.vmem [resolvable:$false] %s789_s28 }
  0x3c   : > { %s791_s29 = scalar_lea.vmem %s790_s28, 64  ;;  %p792_p7 = scmp.lt.s32.totalorder %s211_s10, %s790_s28 }
  0x3d   : > { %p787_p5 = pnand %p785_p3, %p741_p11  ;;  %p793_p4 = scmp.lt.s32.totalorder %s791_s29, %s784_s25 }
  0x3f   : > { %p788_p6 = pneg %p787_p5  ;;  %p794_p10 = por %p793_p4, %p792_p7 }
  0x41   : > { %p795_p12 = pnand %p794_p10, %p788_p6 }
  0x43   : > { %798 = shalt.err (!%p795_p12)
}
  0x44   : > { %676 = dma.hbm_to_vmem [thread:$0]  (!%p943_p9), %s988_s18, 32, %s211_s10, %s198_s30  }
  0x45   : > { %p1123_p8 = scmp.ne.s32.totalorder %s1122_s4, 0 }
  0x46   : > { %s233_s8 = sand.u32 (!%p1123_p8), 1, %s837_s13   ;;  %p1124_p11 = scmp.ne.s32.totalorder (!%p1123_p8), %s1120_s23, 0 }
  0x47   : > { %231 = sbr.rel (%p1123_p8) target bundleno = 306 (0x132), region = 32  ;;  %s657_s9 = sshll.u32 (!%p1123_p8), %s233_s8, 3 }
  0x48   : > { %s234_s11 = scalar_lea.sflag (!%p1123_p8), [#allocation4], %s233_s8  ;;  %s237_s12 = scalar_lea.vmem (!%p1123_p8), [#allocation3], %s657_s9 }
  0x4e   : > { %824 = dma.done.wait (%p1124_p11), %s234_s11, 128  }
  0x4f   : > { %826 = vsyncadd (%p1124_p11), %s234_s11, 4294967168  ;;  %s658_s5 = sshll.u32 %s233_s8, 1  ;;  %s243_s7 = scalar_lea.sflag [#allocation6], %s233_s8 }
  0x50   : > { %s246_s6 = scalar_lea.vmem [#allocation5], %s658_s5 }
  0x51   : > { %828 = dma.done.wait (%p1124_p11), %s243_s7, 32  }
  0x52   : > { %830 = vsyncadd (%p1124_p11), %s243_s7, 4294967264  ;;  %p289_p7 = scmp.lt.s32.totalorder %s845_s15, 1  ;;  %vm310_vm0 = vcmask 11264   ;;  %v859_v0 = vmov 0.0   ;;  %v1032_v1 = vld [vmem:[%s246_s6] sm:$0x3]  ;;  %v389_v61 = vlaneseq }
  0x53   : > { %311 = vst.msk [vmem:[#allocation2] sm:$0xf] %vm310_vm0, %v859_v0  ;;  %312 = vst.msk [vmem:[#allocation2 + $0x4] sm:$0xf] %vm310_vm0, %v859_v0  ;;  %v314_v3 = vld [vmem:[%s237_s12] sm:$0x3] }
  0x54   : > { %313 = vst.msk [vmem:[#allocation2 + $0x8] sm:$0xf] %vm310_vm0, %v859_v0  ;;  %s1133_s15 = smov (!%p289_p7, %s845_s15), 1  ;;  %vm355_vm2 = vcmp.eq.f32.partialorder %v1032_v1, 0.0  ;;  %vm372_vm3 = vcmask 1041408   ;;  %vm356_vm4 = vcmp.eq.f32.partialorder %v1032_v1, 1.0 }
  0x55   : > { %s659_s4 = sshll.u32 %s1133_s15, 1  ;;  %v315_v4 = vld [vmem:[%s237_s12 + $0x2] sm:$0x3]  ;;  %v316_v6 = vld [vmem:[%s237_s12 + $0x4] sm:$0x3]  ;;  %vm357_vm5 = vcmp.eq.f32.partialorder %v1032_v1, 2.0 }
  0x56   : > { %s295_s23 = scalar_lea.vmem %s1116_s2, %s659_s4  ;;  %v321_v7 = vmax.f32 %v314_v3, %v315_v4  ;;  %v317_v10 = vld [vmem:[%s237_s12 + $0x6] sm:$0x3]  ;;  %vm358_vm6 = vcmp.eq.f32.partialorder %v1032_v1, 3.0  ;;  %v390_v63 = vand.u32 127, %v389_v61  ;;  %vm407_vm7 = vcmask 1041409   ;;  %s665_s30 = smul.u32 12, %s1133_s15 }
  0x57   : > { %v319_v2 = vld [vmem:[%s295_s23] sm:$0x3]  ;;  %vm411_vm8 = vcmask 1043459   ;;  %vm409_vm9 = vcmask 1042434  }
  0x58   : > { %vm320_vm1 = vcmp.ne.f32.partialorder %v319_v2, 1.0  ;;  %v322_v12 = vmax.f32 %v321_v7, %v316_v6  ;;  %s305_s22 = scalar_lea.vmem %s1117_s3, %s665_s30 }
  0x59   : > { %v1037_v5 = vsel %vm320_vm1, 1.0, %v859_v0  ;;  %v392_v0 = vshrl.u32 %v389_v61, 7 }
  0x5a   : > { %v363_v8 = vsel %vm355_vm2, %v1037_v5, 0.0  ;;  %v364_v9 = vsel %vm356_vm4, %v1037_v5, 0.0  ;;  %v323_v14 = vmax.f32 %v322_v12, %v317_v10  ;;  %v365_v15 = vsel %vm357_vm5, %v1037_v5, 0.0  ;;  %v371_v12 = vld [vmem:[#allocation2] sm:$0xf] }
  0x5b   : > { %v419_v11 = vsel %vm372_vm3, %v363_v8, 0.0  ;;  %v422_v13 = vsel %vm372_vm3, %v364_v9, 0.0  ;;  %v425_v20 = vsel %vm372_vm3, %v365_v15, 0.0  ;;  %v366_v57 = vsel %vm358_vm6, %v1037_v5, 0.0 }
  0x5c   : > { %420 = vadd.xlane.f32.xlu1 %v419_v11  ;;  %v324_v16 = vsub.f32 %v314_v3, %v323_v14  ;;  %v325_v17 = vsub.f32 %v315_v4, %v323_v14  ;;  %v326_v18 = vsub.f32 %v316_v6, %v323_v14  ;;  %v327_v19 = vsub.f32 %v317_v10, %v323_v14 }
  0x5d   : > { %v428_v58 = vsel %vm372_vm3, %v366_v57, 0.0  ;;  %v393_v4 = vsub.s32 %v390_v63, %v392_v0 }
  0x5e   : > { %v328_v21 = vmul.f32 1.442695, %v324_v16  ;;  %v330_v22 = vmul.f32 1.442695, %v325_v17  ;;  %v332_v23 = vmul.f32 1.442695, %v326_v18 }
  0x5f   : > { %v334_v24 = vmul.f32 1.442695, %v327_v19 }
  0x60   : > { %423 = vadd.xlane.f32.xlu1 %v422_v13  ;;  %729 = vpow2.f32 %v328_v21 }
  0x61   : > { %731 = vpow2.f32 %v330_v22 }
  0x62   : > { %733 = vpow2.f32 %v332_v23 }
  0x63   : > { %735 = vpow2.f32 %v334_v24 }
  0x64   : > { %426 = vadd.xlane.f32.xlu1 %v425_v20 }
  0x6a   : > { %v730_v25 = vpop.eup %729 }
  0x6b   : > { %v732_v26 = vpop.eup %731 }
  0x6c   : > { %v734_v27 = vpop.eup %733  ;;  %v336_v28 = vadd.f32 %v732_v26, %v730_v25 }
  0x6d   : > { %v736_v29 = vpop.eup %735 }
  0x6e   : > { %v337_v30 = vadd.f32 %v734_v27, %v336_v28 }
  0x70   : > { %v338_v31 = vadd.f32 %v736_v29, %v337_v30 }
  0x72   : > { %737 = vrcp.f32 %v338_v31 }
  0x7c   : > { %v738_v32 = vpop.eup %737 }
  0x7d   : > { %v340_v33 = vmul.f32 %v738_v32, %v730_v25  ;;  %v341_v34 = vmul.f32 %v738_v32, %v732_v26  ;;  %v343_v35 = vmul.f32 %v738_v32, %v736_v29  ;;  %v342_v36 = vmul.f32 %v738_v32, %v734_v27  ;;  %v458_v27 = vld [vmem:[#allocation2 + $0x8] sm:$0xf] }
  0x7f   : > { %v347_v37 = vsel %vm320_vm1, %v340_v33, 0.0  ;;  %v348_v38 = vsel %vm320_vm1, %v341_v34, 0.0  ;;  %v350_v39 = vsel %vm320_vm1, %v343_v35, 0.0  ;;  %v349_v45 = vsel %vm320_vm1, %v342_v36, 0.0  ;;  %v418_v33 = vld [vmem:[#allocation2 + $0x4] sm:$0xf] }
  0x80   : > { %v359_v40 = vsel %vm355_vm2, %v347_v37, 0.0  ;;  %v360_v41 = vsel %vm356_vm4, %v348_v38, 0.0  ;;  %v362_v42 = vsel %vm358_vm6, %v350_v39, 0.0  ;;  %v368_v46 = vmul.f32 %v348_v38, %v348_v38 }
  0x81   : > { %v373_v43 = vsel %vm372_vm3, %v359_v40, 0.0  ;;  %v382_v44 = vsel %vm372_vm3, %v362_v42, 0.0  ;;  %v376_v47 = vsel %vm372_vm3, %v360_v41, 0.0  ;;  %v370_v48 = vmul.f32 %v350_v39, %v350_v39 }
  0x82   : > { %374 = vadd.xlane.f32.xlu0 %v373_v43  ;;  %383 = vadd.xlane.f32.xlu1 %v382_v44  ;;  %v361_v49 = vsel %vm357_vm5, %v349_v45, 0.0  ;;  %v462_v50 = vsel %vm372_vm3, %v368_v46, 0.0  ;;  %v367_v52 = vmul.f32 %v347_v37, %v347_v37  ;;  %v369_v55 = vmul.f32 %v349_v45, %v349_v45 }
  0x83   : > { %v379_v51 = vsel %vm372_vm3, %v361_v49, 0.0  ;;  %v468_v53 = vsel %vm372_vm3, %v370_v48, 0.0 }
  0x84   : > { %v459_v54 = vsel %vm372_vm3, %v367_v52, 0.0  ;;  %v465_v56 = vsel %vm372_vm3, %v369_v55, 0.0 }
  0x86   : > { %377 = vadd.xlane.f32.xlu0 %v376_v47  ;;  %463 = vadd.xlane.f32.xlu1 %v462_v50 }
  0x8a   : > { %380 = vadd.xlane.f32.xlu0 %v379_v51  ;;  %469 = vadd.xlane.f32.xlu1 %v468_v53 }
  0x8e   : > { %460 = vadd.xlane.f32.xlu0 %v459_v54 }
  0x92   : > { %466 = vadd.xlane.f32.xlu0 %v465_v56 }
  0x96   : > { %429 = vadd.xlane.f32.xlu0 %v428_v58 }
  0xe9   : > { %v421_v59 = vpop.xlane.xlu1 %420 }
  0xea   : > { %v438_v20 = vrot.slane %v421_v59, %v393_v4 }
  0xed   : > { %v424_v60 = vpop.xlane.xlu1 %423 }
  0xee   : > { %v442_v21 = vrot.slane %v424_v60, %v393_v4 }
  0xf0   : > { %v451_v28 = vsel %vm407_vm7, %v442_v21, %v438_v20 }
  0xf1   : > { %v427_v62 = vpop.xlane.xlu1 %426 }
  0xf2   : > { %v446_v25 = vrot.slane %v427_v62, %v393_v4 }
  0xf4   : > { %v452_v35 = vsel %vm409_vm9, %v446_v25, %v451_v28 }
 0x10f   : > { %v375_v2 = vpop.xlane.xlu0 %374  ;;  %v384_v3 = vpop.xlane.xlu1 %383 }
 0x110   : > { %v394_v9 = vrot.slane %v375_v2, %v393_v4  ;;  %v406_v10 = vrot.slane %v384_v3, %v393_v4 }
 0x113   : > { %v378_v6 = vpop.xlane.xlu0 %377  ;;  %v464_v8 = vpop.xlane.xlu1 %463 }
 0x114   : > { %v398_v7 = vrot.slane %v378_v6, %v393_v4  ;;  %v482_v18 = vrot.slane %v464_v8, %v393_v4 }
 0x116   : > { %v408_v11 = vsel %vm407_vm7, %v398_v7, %v394_v9 }
 0x117   : > { %v381_v1 = vpop.xlane.xlu0 %380  ;;  %v470_v17 = vpop.xlane.xlu1 %469 }
 0x118   : > { %v402_v5 = vrot.slane %v381_v1, %v393_v4  ;;  %v490_v23 = vrot.slane %v470_v17, %v393_v4 }
 0x11a   : > { %v410_v13 = vsel %vm409_vm9, %v402_v5, %v408_v11 }
 0x11b   : > { %v412_v14 = vsel %vm411_vm8, %v406_v10, %v410_v13  ;;  %v461_v15 = vpop.xlane.xlu0 %460 }
 0x11c   : > { %v414_v16 = vadd.f32 %v412_v14, %v371_v12  ;;  %v478_v19 = vrot.slane %v461_v15, %v393_v4 }
 0x11e   : > { %416 = vst.msk [vmem:[#allocation2] sm:$0xf] %vm310_vm0, %v414_v16  ;;  %v491_v26 = vsel %vm407_vm7, %v482_v18, %v478_v19 }
 0x11f   : > { %v467_v22 = vpop.xlane.xlu0 %466 }
 0x120   : > { %v486_v24 = vrot.slane %v467_v22, %v393_v4 }
 0x122   : > { %v492_v29 = vsel %vm409_vm9, %v486_v24, %v491_v26 }
 0x123   : > { %v493_v30 = vsel %vm411_vm8, %v490_v23, %v492_v29  ;;  %v430_v31 = vpop.xlane.xlu0 %429 }
 0x124   : > { %v495_v32 = vadd.f32 %v493_v30, %v458_v27  ;;  %v450_v34 = vrot.slane %v430_v31, %v393_v4 }
 0x125   : > { %v500_v36 = vld [vmem:[#allocation2] sm:$0xf] }
 0x126   : > { %503 = vst.msk [vmem:[%s305_s22] sm:$0xf] %vm310_vm0, %v500_v36  ;;  %496 = vst.msk [vmem:[#allocation2 + $0x8] sm:$0xf] %vm310_vm0, %v495_v32  ;;  %v453_v37 = vsel %vm411_vm8, %v450_v34, %v452_v35 }
 0x127   : > { %v455_v38 = vadd.f32 %v453_v37, %v418_v33 }
 0x129   : > { %456 = vst.msk [vmem:[#allocation2 + $0x4] sm:$0xf] %vm310_vm0, %v455_v38 }
 0x12d   : > { %v502_v39 = vld [vmem:[#allocation2 + $0x8] sm:$0xf] }
 0x12e   : > { %505 = vst.msk [vmem:[%s305_s22 + $0x8] sm:$0xf] %vm310_vm0, %v502_v39 }
 0x130   : > { %v501_v40 = vld [vmem:[#allocation2 + $0x4] sm:$0xf] }
 0x131   : > { %504 = vst.msk [vmem:[%s305_s22 + $0x4] sm:$0xf] %vm310_vm0, %v501_v40 }
 0x132 PF: > { %s19_s17 = sadd.s32 1, %s853_s17   ;;  %s1125_s12 = smov %s837_s13 }
 0x133   : > { %p16_p9 = scmp.ge.s32.totalorder %s19_s17, 4   ;;  %s1126_s13 = smov %s841_s14 }
 0x134   : > { %s1127_s14 = smov %s929_s24  ;;  %s1128_s15 = smov %s849_s16 }
 0x135   : > { %s1129_s16 = smov %s1131_s19  ;;  %18 = sbr.rel (!%p16_p9) target bundleno = 6 (0x6), region = 98 }
 0x13c   :  { %535 = vsyncpa [#allocation4], 1 }
 0x13d   :  { %537 = vsyncpa [#allocation4 + $0x1], 1 }
 0x13e   :  { %538 = vsyncpa [#allocation6], 1 }
 0x13f   :  { %540 = vsyncpa [#allocation6 + $0x1], 1 }

</bundles_post_ra>
